<compile_context>
chip_gen: v5e
topology: v5e:2x2
jax: 0.10.0
libtpu: 0.0.40
codegen_flags: <defaults>
</compile_context>

<pallas_src>
import functools

import jax
import jax.numpy as jnp
from jax import lax
from jax.experimental import pallas as pl
from jax.experimental.pallas import tpu as pltpu

H = 128      # padded hidden width (fc1: 64 -> 128, fc2: 16 -> 128 lanes)
HEAD = 128   # padded fused head width (num_point + num_class -> 128 lanes)


def _decoder_head_kernel(x_ref, w1_ref, b1_ref, w2_ref, b2_ref,
                         wh_ref, bh_ref, out_ref, *, num_point):
    x = x_ref[...]  # (TM, D) bf16

    # fc1 + ReLU  (f32 accumulate, re-narrow to bf16 for the next MXU pass)
    h1 = jnp.dot(x, w1_ref[...], preferred_element_type=jnp.float32) + b1_ref[...]
    h1 = jnp.maximum(h1, 0.0).astype(x.dtype)

    # fc2 + ReLU
    h2 = jnp.dot(h1, w2_ref[...], preferred_element_type=jnp.float32) + b2_ref[...]
    h2 = jnp.maximum(h2, 0.0).astype(x.dtype)

    # fused (bound | classification) head: one matmul, one lane-dense store.
    z = jnp.dot(h2, wh_ref[...], preferred_element_type=jnp.float32) + bh_ref[...]

    lane = lax.broadcasted_iota(jnp.int32, z.shape, dimension=1)
    out = jnp.where(lane < num_point, jax.nn.sigmoid(z), z)
    out_ref[...] = out.astype(out_ref.dtype)


def decoder_head_forward(x, prep, *, tm=128):
    """x: (B, D) float32. prep: padded/fused params from prepare_params."""
    B, D = x.shape
    num_point = prep["num_point"]
    num_class = prep["num_class"]

    b_pad = pl.cdiv(B, tm) * tm
    x_b = x.astype(jnp.bfloat16)
    if b_pad != B:
        x_b = jnp.pad(x_b, ((0, b_pad - B), (0, 0)))

    const = lambda i: (0, 0)
    flops = 2 * b_pad * (D * H + H * H + H * HEAD)
    bytes_accessed = (b_pad * D * 2 + b_pad * HEAD * 4
                      + (D * H + H * H + H * HEAD) * 2 + 3 * (H + HEAD) * 4)
    cost = pl.CostEstimate(flops=flops,
                           transcendentals=b_pad * HEAD,
                           bytes_accessed=bytes_accessed)

    out = pl.pallas_call(
        functools.partial(_decoder_head_kernel, num_point=num_point),
        out_shape=jax.ShapeDtypeStruct((b_pad, HEAD), jnp.float32),
        grid=(b_pad // tm,),
        in_specs=[
            pl.BlockSpec((tm, D), lambda i: (i, 0)),   # x: tiled over batch
            pl.BlockSpec((D, H), const),               # weights: VMEM-resident
            pl.BlockSpec((1, H), const),
            pl.BlockSpec((H, H), const),
            pl.BlockSpec((1, H), const),
            pl.BlockSpec((H, HEAD), const),
            pl.BlockSpec((1, HEAD), const),
        ],
        out_specs=pl.BlockSpec((tm, HEAD), lambda i: (i, 0)),
        compiler_params=pltpu.CompilerParams(dimension_semantics=("parallel",)),
        cost_estimate=cost,
    )(x_b, prep["w1"], prep["b1"], prep["w2"], prep["b2"], prep["wh"], prep["bh"])

    bound = out[:B, :num_point]
    cls = out[:B, num_point:num_point + num_class]
    return bound, cls


def init_params(key, input_dim, num_of_class, num_point):
    """Deterministic synthetic init (PyTorch-style uniform ranges), unpadded."""
    def linear(k, fan_in, fan_out):
        kw, kb = jax.random.split(k)
        bound = 1.0 / jnp.sqrt(fan_in)
        w = jax.random.uniform(kw, (fan_in, fan_out), jnp.float32, -bound, bound)
        b = jax.random.uniform(kb, (1, fan_out), jnp.float32, -bound, bound)
        return w, b

    k1, k2, k3, k4, k5 = jax.random.split(key, 5)
    w1, b1 = linear(k1, input_dim, 64)
    w2, b2 = linear(k2, 64, 16)
    wb, bb = linear(k3, 16, num_point)
    wc, bc = linear(k4, 16, num_of_class)
    # orientation head exists in __init__ but is unused in forward:
    wo, bo = linear(k5, 16, 20)
    return {
        "w1": w1, "b1": b1,
        "w2": w2, "b2": b2,
        "wb": wb, "bb": bb,
        "wc": wc, "bc": bc,
        "wo": wo, "bo": bo,  # unused, kept for parameter-shape parity
    }


def prepare_params(p, input_dim, num_point, num_class):
    """Zero-pad to 128 lanes, fuse the two heads, cast weights to bf16."""
    def pad2(w, rows, cols):
        out = jnp.zeros((rows, cols), jnp.float32)
        return out.at[: w.shape[0], : w.shape[1]].set(w)

    w1 = pad2(p["w1"], input_dim, H).astype(jnp.bfloat16)
    b1 = pad2(p["b1"], 1, H)                               # f32 bias
    w2 = pad2(p["w2"], H, H).astype(jnp.bfloat16)
    b2 = pad2(p["b2"], 1, H)
    wh = pad2(jnp.concatenate([p["wb"], p["wc"]], axis=1), H, HEAD).astype(jnp.bfloat16)
    bh = pad2(jnp.concatenate([p["bb"], p["bc"]], axis=1), 1, HEAD)
    return {"w1": w1, "b1": b1, "w2": w2, "b2": b2, "wh": wh, "bh": bh,
            "num_point": num_point, "num_class": num_class}


def reference_forward(x, prep, num_point, num_class):
    """Pure-JAX reference following the exact same (padded bf16) arithmetic path."""
    xb = x.astype(jnp.bfloat16)
    h1 = jnp.maximum(
        jnp.dot(xb, prep["w1"], preferred_element_type=jnp.float32) + prep["b1"], 0.0
    ).astype(jnp.bfloat16)
    h2 = jnp.maximum(
        jnp.dot(h1, prep["w2"], preferred_element_type=jnp.float32) + prep["b2"], 0.0
    ).astype(jnp.bfloat16)
    z = jnp.dot(h2, prep["wh"], preferred_element_type=jnp.float32) + prep["bh"]
    bound = jax.nn.sigmoid(z[:, :num_point])
    cls = z[:, num_point:num_point + num_class]
    return bound, cls


if __name__ == "__main__":
    key = jax.random.PRNGKey(0)
    kx, kp = jax.random.split(key)

    B, input_dim, num_of_class, num_point = 512, 32, 5, 12
    x = jax.random.normal(kx, (B, input_dim), jnp.float32)

    raw_params = init_params(kp, input_dim, num_of_class, num_point)
    prep = prepare_params(raw_params, input_dim, num_point, num_of_class)

    bound, cls = decoder_head_forward(x, prep, tm=128)
    jax.block_until_ready((bound, cls))

    bound_ref, cls_ref = reference_forward(x, prep, num_point, num_of_class)
    assert bound.shape == (B, num_point) and cls.shape == (B, num_of_class)
    assert jnp.allclose(bound, bound_ref, atol=2e-2, rtol=2e-2)
    assert jnp.allclose(cls, cls_ref, atol=2e-2, rtol=2e-2)

    print("KERNEL_OK")
</pallas_src>

<mosaic_0001>
module attributes {stable_mosaic.version = 11 : i64} {
  func.func @_decoder_head_kernel(%arg0: i32, %arg1: memref<128x32xbf16, #tpu.memory_space<vmem>>, %arg2: memref<32x128xbf16, #tpu.memory_space<vmem>>, %arg3: memref<1x128xf32, #tpu.memory_space<vmem>>, %arg4: memref<128x128xbf16, #tpu.memory_space<vmem>>, %arg5: memref<1x128xf32, #tpu.memory_space<vmem>>, %arg6: memref<128x128xbf16, #tpu.memory_space<vmem>>, %arg7: memref<1x128xf32, #tpu.memory_space<vmem>>, %arg8: memref<128x128xf32, #tpu.memory_space<vmem>>) attributes {dimension_semantics = [#tpu.dimension_semantics<parallel>], iteration_bounds = array<i64: 4>, scalar_prefetch = 0 : i64, scratch_operands = 0 : i64, tpu.core_type = #tpu.core_type<tc>, window_params = [{transform_indices = @transform_0, window_bounds = array<i64: 128, 32>}, {pipeline_mode = #tpu.pipeline_mode<synchronous>, transform_indices = @transform_1, window_bounds = array<i64: 32, 128>}, {pipeline_mode = #tpu.pipeline_mode<synchronous>, transform_indices = @transform_2, window_bounds = array<i64: 1, 128>}, {pipeline_mode = #tpu.pipeline_mode<synchronous>, transform_indices = @transform_3, window_bounds = array<i64: 128, 128>}, {pipeline_mode = #tpu.pipeline_mode<synchronous>, transform_indices = @transform_4, window_bounds = array<i64: 1, 128>}, {pipeline_mode = #tpu.pipeline_mode<synchronous>, transform_indices = @transform_5, window_bounds = array<i64: 128, 128>}, {pipeline_mode = #tpu.pipeline_mode<synchronous>, transform_indices = @transform_6, window_bounds = array<i64: 1, 128>}, {transform_indices = @transform_7, window_bounds = array<i64: 128, 128>}]} {
    %c0 = arith.constant 0 : index
    %c0_0 = arith.constant 0 : index
    %0 = vector.load %arg1[%c0, %c0_0] : memref<128x32xbf16, #tpu.memory_space<vmem>>, vector<128x32xbf16>
    %c0_1 = arith.constant 0 : index
    %c0_2 = arith.constant 0 : index
    %1 = vector.load %arg2[%c0_1, %c0_2] : memref<32x128xbf16, #tpu.memory_space<vmem>>, vector<32x128xbf16>
    %cst = arith.constant dense<0.000000e+00> : vector<128x128xf32>
    %2 = tpu.matmul %0, %1, %cst {dimension_numbers = #tpu.dot_dimension_numbers<[1], [0], [0], [1], [0, 0, 1, 1], [], []>} : vector<128x32xbf16>, vector<32x128xbf16>, vector<128x128xf32> -> vector<128x128xf32>
    %c0_3 = arith.constant 0 : index
    %c0_4 = arith.constant 0 : index
    %3 = vector.load %arg3[%c0_3, %c0_4] : memref<1x128xf32, #tpu.memory_space<vmem>>, vector<1x128xf32>
    %4 = vector.broadcast %3 : vector<1x128xf32> to vector<128x128xf32>
    %5 = arith.addf %2, %4 : vector<128x128xf32>
    %cst_5 = arith.constant 0.000000e+00 : f32
    %6 = vector.broadcast %cst_5 : f32 to vector<128x128xf32>
    %7 = arith.maximumf %5, %6 : vector<128x128xf32>
    %8 = arith.truncf %7 : vector<128x128xf32> to vector<128x128xbf16>
    %c0_6 = arith.constant 0 : index
    %c0_7 = arith.constant 0 : index
    %9 = vector.load %arg4[%c0_6, %c0_7] : memref<128x128xbf16, #tpu.memory_space<vmem>>, vector<128x128xbf16>
    %cst_8 = arith.constant dense<0.000000e+00> : vector<128x128xf32>
    %10 = tpu.matmul %8, %9, %cst_8 {dimension_numbers = #tpu.dot_dimension_numbers<[1], [0], [0], [1], [0, 0, 1, 1], [], []>} : vector<128x128xbf16>, vector<128x128xbf16>, vector<128x128xf32> -> vector<128x128xf32>
    %c0_9 = arith.constant 0 : index
    %c0_10 = arith.constant 0 : index
    %11 = vector.load %arg5[%c0_9, %c0_10] : memref<1x128xf32, #tpu.memory_space<vmem>>, vector<1x128xf32>
    %12 = vector.broadcast %11 : vector<1x128xf32> to vector<128x128xf32>
    %13 = arith.addf %10, %12 : vector<128x128xf32>
    %cst_11 = arith.constant 0.000000e+00 : f32
    %14 = vector.broadcast %cst_11 : f32 to vector<128x128xf32>
    %15 = arith.maximumf %13, %14 : vector<128x128xf32>
    %16 = arith.truncf %15 : vector<128x128xf32> to vector<128x128xbf16>
    %c0_12 = arith.constant 0 : index
    %c0_13 = arith.constant 0 : index
    %17 = vector.load %arg6[%c0_12, %c0_13] : memref<128x128xbf16, #tpu.memory_space<vmem>>, vector<128x128xbf16>
    %cst_14 = arith.constant dense<0.000000e+00> : vector<128x128xf32>
    %18 = tpu.matmul %16, %17, %cst_14 {dimension_numbers = #tpu.dot_dimension_numbers<[1], [0], [0], [1], [0, 0, 1, 1], [], []>} : vector<128x128xbf16>, vector<128x128xbf16>, vector<128x128xf32> -> vector<128x128xf32>
    %c0_15 = arith.constant 0 : index
    %c0_16 = arith.constant 0 : index
    %19 = vector.load %arg7[%c0_15, %c0_16] : memref<1x128xf32, #tpu.memory_space<vmem>>, vector<1x128xf32>
    %20 = vector.broadcast %19 : vector<1x128xf32> to vector<128x128xf32>
    %21 = arith.addf %18, %20 : vector<128x128xf32>
    %22 = tpu.iota {dimensions = array<i32: 1>} : vector<128x128xi32>
    %c12_i32 = arith.constant 12 : i32
    %23 = vector.broadcast %c12_i32 : i32 to vector<128x128xi32>
    %24 = arith.cmpi slt, %22, %23 : vector<128x128xi32>
    %25 = arith.negf %21 : vector<128x128xf32>
    %26 = math.exp %25 : vector<128x128xf32>
    %cst_17 = arith.constant 1.000000e+00 : f32
    %27 = vector.broadcast %cst_17 : f32 to vector<128x128xf32>
    %28 = arith.addf %27, %26 : vector<128x128xf32>
    %29 = arith.divf %27, %28 : vector<128x128xf32>
    %30 = arith.select %24, %29, %21 : vector<128x128xi1>, vector<128x128xf32>
    %c0_18 = arith.constant 0 : index
    %c0_19 = arith.constant 0 : index
    %31 = vector.load %arg8[%c0_18, %c0_19] : memref<128x128xf32, #tpu.memory_space<vmem>>, vector<128x128xf32>
    tpu.vector_store %arg8[%c0_18, %c0_19], %30 {strides = array<i32>} : memref<128x128xf32, #tpu.memory_space<vmem>>, vector<128x128xf32>,
    return
  }
  func.func @transform_0(%arg0: i32) -> (i32, i32) {
    %c0_i32 = arith.constant 0 : i32
    %c0_i32_0 = arith.constant 0 : i32
    return %arg0, %c0_i32 : i32, i32
  }
  func.func @transform_1(%arg0: i32) -> (i32, i32) {
    %c0_i32 = arith.constant 0 : i32
    %c0_i32_0 = arith.constant 0 : i32
    %c0_i32_1 = arith.constant 0 : i32
    return %c0_i32, %c0_i32_0 : i32, i32
  }
  func.func @transform_2(%arg0: i32) -> (i32, i32) {
    %c0_i32 = arith.constant 0 : i32
    %c0_i32_0 = arith.constant 0 : i32
    %c0_i32_1 = arith.constant 0 : i32
    return %c0_i32, %c0_i32_0 : i32, i32
  }
  func.func @transform_3(%arg0: i32) -> (i32, i32) {
    %c0_i32 = arith.constant 0 : i32
    %c0_i32_0 = arith.constant 0 : i32
    %c0_i32_1 = arith.constant 0 : i32
    return %c0_i32, %c0_i32_0 : i32, i32
  }
  func.func @transform_4(%arg0: i32) -> (i32, i32) {
    %c0_i32 = arith.constant 0 : i32
    %c0_i32_0 = arith.constant 0 : i32
    %c0_i32_1 = arith.constant 0 : i32
    return %c0_i32, %c0_i32_0 : i32, i32
  }
  func.func @transform_5(%arg0: i32) -> (i32, i32) {
    %c0_i32 = arith.constant 0 : i32
    %c0_i32_0 = arith.constant 0 : i32
    %c0_i32_1 = arith.constant 0 : i32
    return %c0_i32, %c0_i32_0 : i32, i32
  }
  func.func @transform_6(%arg0: i32) -> (i32, i32) {
    %c0_i32 = arith.constant 0 : i32
    %c0_i32_0 = arith.constant 0 : i32
    %c0_i32_1 = arith.constant 0 : i32
    return %c0_i32, %c0_i32_0 : i32, i32
  }
  func.func @transform_7(%arg0: i32) -> (i32, i32) {
    %c0_i32 = arith.constant 0 : i32
    %c0_i32_0 = arith.constant 0 : i32
    return %arg0, %c0_i32 : i32, i32
  }
}

</mosaic_0001>

<bundles_post_ra>
// kernel: tpu_custom_call.1
= control target key start
LH: loop header
LB: loop body
LE: loop exit
PB: predicated region body
PF: predicated region fallthrough
CT: control target
= control target key end

     0   :  { %12 = vsyncpa [#allocation3], 0  ;;  %s1846_s0 = inlined_call_operand.vmem [shape: bf16[512,32], index: 0, kind: input, shape index: {}]   ;;  %s1847_s1 = inlined_call_operand.vmem [shape: bf16[32,128], index: 1, kind: input, shape index: {}]   ;;  %s1848_s2 = inlined_call_operand.vmem [shape: f32[1,128], index: 2, kind: input, shape index: {}]   ;;  %s1849_s3 = inlined_call_operand.vmem [shape: bf16[128,128], index: 3, kind: input, shape index: {}]   ;;  %s1850_s4 = inlined_call_operand.vmem [shape: f32[1,128], index: 4, kind: input, shape index: {}]   ;;  %s1851_s5 = inlined_call_operand.vmem [shape: bf16[128,128], index: 5, kind: input, shape index: {}]   ;;  %s1852_s6 = inlined_call_operand.vmem [shape: f32[1,128], index: 6, kind: input, shape index: {}]   ;;  %s1853_s7 = inlined_call_operand.hbm [shape: f32[512,128], index: 7, kind: output, shape index: {}]  }
   0x1   :  { %14 = vsyncpa [#allocation3 + $0x1], 0  ;;  %s1527_s24 = smov 0   ;;  %s1529_s25 = smov 0  }
   0x2   :  { %s1531_s26 = smov 0   ;;  %s1533_s27 = smov 0  }
   0x3 LB: > { %s1548_s28 = sadd.s32 4294967295, %s1483_s27   ;;  %s1130_s29 = sadd.s32 4294967294, %s1483_s27   ;;  %s1483_s27 = sphi %s1533_s27, %s1859_s27   ;;  %s1479_s26 = sphi %s1531_s26, %s1858_s26   ;;  %s1475_s25 = sphi %s1529_s25, %s1857_s25   ;;  %s1471_s24 = sphi %s1527_s24, %s1856_s24  }
   0x4   : > { %s1552_s30 = sadd.s32 1, %s1483_s27   ;;  %s179_s8 = sadd.s32 1, %s1479_s26 }
   0x5   : > { %s176_s9 = ssub.s32 %s1483_s27, %s1552_s30  ;;  %p189_p0 = scmp.ne.s32.totalorder %s1479_s26, %s1475_s25 }
   0x6   : > { %p177_p1 = scmp.eq.s32.totalorder %s176_s9, 0  ;;  %p190_p2 = scmp.eq.s32.totalorder %s1548_s28, 3 }
   0x7   : > { %p195_p3 = scmp.ne.s32.totalorder %s1475_s25, %s1471_s24  ;;  %p196_p4 = scmp.eq.s32.totalorder %s1130_s29, 3 }
   0x8   : > { %s1563_s10 = scalar_select %p177_p1, %s1479_s26, %s179_s8  }
   0x9   : > { %p1565_p5 = por %p190_p2, %p189_p0  ;;  %p1569_p6 = por %p196_p4, %p195_p3 }
   0xa   : > { %p1133_p7 = scmp.ge.s32.totalorder %s1483_s27, 1  ;;  %p241_p8 = scmp.lt.s32.totalorder %s1483_s27, 5 }
   0xc   : > { %p242_p9 = pnand %p1133_p7, %p241_p8 }
   0xd   : > { %s1135_s15 = sshll.u32 (!%p242_p9), %s1548_s28, 4  ;;  %s1296_s22 = sshll.u32 (!%p242_p9), %s1548_s28, 7 }
   0xe   : > { %245 = sbr.rel (%p242_p9) target bundleno = 600 (0x258), region = 48  ;;  %p274_p10 = scmp.lt.s32.totalorder (!%p242_p9), %s1135_s15, 63 }
   0xf   : > { %s1064_s8 = scalar_lea.hbm (!%p242_p9), %s1853_s7, %s1296_s22  ;;  %s1441_s17 = scalar_lea.hbm (!%p242_p9), %s1853_s7, 512 }
  0x10   : > { %s1067_s9 = sshll.u32 (!%p242_p9), %s1064_s8, 4  ;;  %s1068_s9 = int_to_ptr.hbm [resolvable:$true] %s1067_s9 }
  0x11   : > { %s1435_s13 = sshra.s32 (!%p242_p9), %s1068_s9, 4  ;;  %s1436_s13 = int_to_ptr.hbm [resolvable:$true] %s1435_s13 }
  0x12   : > { %s1437_s14 = scalar_lea.hbm (!%p242_p9), %s1436_s13, 128  ;;  %p1442_p0 = scmp.lt.s32.totalorder (!%p242_p9), %s1436_s13, %s1853_s7 }
  0x13   : > { %v1279_v0 = vld [vmem:[%s1847_s1 + $0x8] sm:$0xff]  ;;  %v1278_v1 = vld [vmem:[%s1847_s1] sm:$0xff]  ;;  %s1861_s15 = smov (!%p274_p10, %s1135_s15), 63  ;;  %vm357_vm0 = vcmask 261120   ;;  %v1287_v7 = vld [vmem:[%s1849_s3 + $0x38] sm:$0xff]  ;;  %p1438_p11 = scmp.ne.s32.totalorder %s1436_s13, %s1437_s14 }
  0x14   : > { %388 = vmatpush.bf16.msra.mxu0 %v1279_v0  ;;  %s1136_s18 = sshll.u32 %s1861_s15, 2  ;;  %523 = vmatpush.bf16.msra.mxu1 %v1287_v7  ;;  %v1286_v9 = vld [vmem:[%s1849_s3 + $0x30] sm:$0xff]  ;;  %v1285_v10 = vld [vmem:[%s1849_s3 + $0x28] sm:$0xff]  ;;  %v1284_v11 = vld [vmem:[%s1849_s3 + $0x20] sm:$0xff]  ;;  %p1443_p1 = scmp.lt.s32.totalorder %s1441_s17, %s1437_s14 }
  0x15   : > { %s1585_s21 = scalar_lea.vmem %s1846_s0, %s1136_s18  ;;  %1297 = vmatpush.bf16.msra.mxu3 %v1287_v7  ;;  %v1283_v12 = vld [vmem:[%s1849_s3 + $0x18] sm:$0xff]  ;;  %v1282_v14 = vld [vmem:[%s1849_s3 + $0x10] sm:$0xff]  ;;  %v1281_v15 = vld [vmem:[%s1849_s3 + $0x8] sm:$0xff]  ;;  %s270_s18 = sand.u32 1, %s1475_s25  }
  0x16   : > { %v1270_v2 = vld [vmem:[%s1585_s21] sm:$0xff]  ;;  %v1271_v3 = vld [vmem:[%s1585_s21 + $0x8] sm:$0xff]  ;;  %v1272_v4 = vld [vmem:[%s1585_s21 + $0x10] sm:$0xff]  ;;  %s1134_s19 = sshll.u32 %s270_s18, 7  ;;  %p1439_p12 = pnand %p1438_p11, %p1565_p5 }
  0x17   : > { %v1273_v5 = vld [vmem:[%s1585_s21 + $0x18] sm:$0xff]  ;;  %v1274_v6 = vld [vmem:[%s1585_s21 + $0x20] sm:$0xff]  ;;  %v1275_v8 = vld [vmem:[%s1585_s21 + $0x28] sm:$0xff]  ;;  %s1701_s20 = scalar_lea.vmem [#allocation2], %s1134_s19  ;;  %p1444_p2 = por %p1443_p1, %p1442_p0 }
  0x18   : > { %389 = vmatpush.bf16.msra.mxu0 %v1278_v1  ;;  %524 = vmatpush.bf16.msra.mxu1 %v1286_v9  ;;  %v1276_v13 = vld [vmem:[%s1585_s21 + $0x30] sm:$0xff]  ;;  %v1280_v16 = vld [vmem:[%s1849_s3] sm:$0xff]  ;;  %v1277_v17 = vld [vmem:[%s1585_s21 + $0x38] sm:$0xff]  ;;  %s1065_s28 = sshll.u32 %s1701_s20, 4  ;;  %s1053_s21 = scalar_lea.sflag [#allocation3], %s270_s18  ;;  %s1066_s28 = int_to_ptr.vmem [resolvable:$true] %s1065_s28 }
  0x19   : > { %1298 = vmatpush.bf16.msra.mxu3 %v1286_v9  ;;  %v1630_v19 = vld [vmem:[%s1848_s2] ss:$0 sm:$0xff]  ;;  %v1295_v58 = vld [vmem:[%s1851_s5 + $0x38] sm:$0xff]  ;;  %v1294_v62 = vld [vmem:[%s1851_s5 + $0x30] sm:$0xff]  ;;  %p1440_p13 = pneg %p1439_p12 }
  0x1a   : > { %664 = vmatpush.bf16.msra.mxu2 %v1295_v58  ;;  %v1293_v0 = vld [vmem:[%s1851_s5 + $0x28] sm:$0xff]  ;;  %v1292_v1 = vld [vmem:[%s1851_s5 + $0x20] sm:$0xff]  ;;  %v1290_v9 = vld [vmem:[%s1851_s5 + $0x10] sm:$0xff] }
  0x1b   : > { %1177 = vmatmul.msk.bf16.vlgmr.msra.gmra.mxu0 %vm357_vm0, %v1270_v2  ;;  %p1445_p3 = pnand %p1444_p2, %p1440_p13 }
  0x1c   : > { %525 = vmatpush.bf16.msra.mxu1 %v1285_v10 }
  0x1d   : > { %1299 = vmatpush.bf16.msra.mxu3 %v1285_v10 }
  0x1e   : > { %665 = vmatpush.bf16.msra.mxu2 %v1294_v62 }
  0x20   : > { %526 = vmatpush.bf16.msra.mxu1 %v1284_v11 }
  0x21   : > { %1300 = vmatpush.bf16.msra.mxu3 %v1284_v11  ;;  %v1289_v11 = vld [vmem:[%s1851_s5 + $0x8] sm:$0xff] }
  0x22   : > { %666 = vmatpush.bf16.msra.mxu2 %v1293_v0 }
  0x24   : > { %527 = vmatpush.bf16.msra.mxu1 %v1283_v12 }
  0x25   : > { %1301 = vmatpush.bf16.msra.mxu3 %v1283_v12  ;;  %v1288_v12 = vld [vmem:[%s1851_s5] sm:$0xff] }
  0x26   : > { %667 = vmatpush.bf16.msra.mxu2 %v1292_v1 }
  0x28   : > { %528 = vmatpush.bf16.msra.mxu1 %v1282_v14 }
  0x29   : > { %1302 = vmatpush.bf16.msra.mxu3 %v1282_v14 }
  0x2b   : > { %1178 = vmatmul.msk.bf16.gmra.mxu0 %vm357_vm0, %v1271_v3 }
  0x2c   : > { %529 = vmatpush.bf16.msra.mxu1 %v1281_v15 }
  0x2d   : > { %1303 = vmatpush.bf16.msra.mxu3 %v1281_v15 }
  0x30   : > { %530 = vmatpush.bf16.msra.mxu1 %v1280_v16 }
  0x31   : > { %1304 = vmatpush.bf16.msra.mxu3 %v1280_v16 }
  0x35   : > { %1305 = vmatpush.bf16.msrb.mxu3 %v1295_v58 }
  0x39   : > { %1306 = vmatpush.bf16.msrb.mxu3 %v1294_v62 }
  0x3b   : > { %1179 = vmatmul.msk.bf16.gmra.mxu0 %vm357_vm0, %v1272_v4 }
  0x3d   : > { %1307 = vmatpush.bf16.msrb.mxu3 %v1293_v0 }
  0x41   : > { %1308 = vmatpush.bf16.msrb.mxu3 %v1292_v1 }
  0x4b   : > { %1180 = vmatmul.msk.bf16.gmra.mxu0 %vm357_vm0, %v1273_v5  ;;  %v1291_v5 = vld [vmem:[%s1851_s5 + $0x18] sm:$0xff] }
  0x4c   : > { %668 = vmatpush.bf16.msra.mxu2 %v1291_v5  ;;  %1309 = vmatpush.bf16.msrb.mxu3 %v1291_v5 }
  0x50   : > { %669 = vmatpush.bf16.msra.mxu2 %v1290_v9  ;;  %1310 = vmatpush.bf16.msrb.mxu3 %v1290_v9 }
  0x54   : > { %670 = vmatpush.bf16.msra.mxu2 %v1289_v11  ;;  %1311 = vmatpush.bf16.msrb.mxu3 %v1289_v11 }
  0x58   : > { %671 = vmatpush.bf16.msra.mxu2 %v1288_v12  ;;  %1312 = vmatpush.bf16.msrb.mxu3 %v1288_v12  ;;  %v1678_v12 = vld [vmem:[%s1852_s6] ss:$0 sm:$0xff] }
  0x5b   : > { %1181 = vmatmul.msk.bf16.gmra.mxu0 %vm357_vm0, %v1274_v6 }
  0x6b   : > { %1182 = vmatmul.msk.bf16.gmra.mxu0 %vm357_vm0, %v1275_v8 }
  0x7b   : > { %1183 = vmatmul.msk.bf16.gmra.mxu0 %vm357_vm0, %v1276_v13 }
  0x8b   : > { %1184 = vmatmul.msk.bf16.gmra.mxu0 %vm357_vm0, %v1277_v17 }
  0x98   : > { %v391_v18 = vpop.f32.mrf.mxu0 }
  0x99   : > { %v392_v20 = vadd.f32 %v1630_v19, %v391_v18 }
  0x9b   : > { %v431_v23 = vmax.f32 %v392_v20, 0.0 }
  0xa0   : > { %v393_v21 = vpop.f32.mrf.mxu0 }
  0xa1   : > { %v394_v22 = vadd.f32 %v1630_v19, %v393_v21  ;;  %v1355_v21 = vld [vmem:[%s1850_s4] ss:$0 sm:$0xff] }
  0xa3   : > { %v432_v24 = vmax.f32 %v394_v22, 0.0 }
  0xa5   : > { %v447_v25 = vpack.c.bf16 %v432_v24, %v431_v23 }
  0xa7   : > { %531 = vmatmul.bf16.vlgmr.msra.gmra.mxu1 %v447_v25 }
  0xa8   : > { %v396_v26 = vpop.f32.mrf.mxu0 }
  0xa9   : > { %v397_v27 = vadd.f32 %v1630_v19, %v396_v26 }
  0xab   : > { %v433_v30 = vmax.f32 %v397_v27, 0.0 }
  0xb0   : > { %v398_v28 = vpop.f32.mrf.mxu0 }
  0xb1   : > { %v399_v29 = vadd.f32 %v1630_v19, %v398_v28 }
  0xb3   : > { %v434_v31 = vmax.f32 %v399_v29, 0.0 }
  0xb5   : > { %v448_v32 = vpack.c.bf16 %v434_v31, %v433_v30 }
  0xb7   : > { %536 = vmatmul.bf16.gmra.mxu1 %v448_v32 }
  0xb8   : > { %v401_v33 = vpop.f32.mrf.mxu0 }
  0xb9   : > { %v402_v34 = vadd.f32 %v1630_v19, %v401_v33 }
  0xbb   : > { %v435_v37 = vmax.f32 %v402_v34, 0.0 }
  0xc0   : > { %v403_v35 = vpop.f32.mrf.mxu0 }
  0xc1   : > { %v404_v36 = vadd.f32 %v1630_v19, %v403_v35 }
  0xc3   : > { %v436_v38 = vmax.f32 %v404_v36, 0.0 }
  0xc5   : > { %v449_v39 = vpack.c.bf16 %v436_v38, %v435_v37 }
  0xc7   : > { %541 = vmatmul.bf16.gmra.mxu1 %v449_v39 }
  0xc8   : > { %v406_v40 = vpop.f32.mrf.mxu0 }
  0xc9   : > { %v407_v41 = vadd.f32 %v1630_v19, %v406_v40 }
  0xcb   : > { %v437_v44 = vmax.f32 %v407_v41, 0.0 }
  0xd0   : > { %v408_v42 = vpop.f32.mrf.mxu0 }
  0xd1   : > { %v409_v43 = vadd.f32 %v1630_v19, %v408_v42 }
  0xd3   : > { %v438_v45 = vmax.f32 %v409_v43, 0.0 }
  0xd5   : > { %v450_v46 = vpack.c.bf16 %v438_v45, %v437_v44 }
  0xd7   : > { %546 = vmatmul.bf16.gmra.mxu1 %v450_v46 }
  0xd8   : > { %v411_v47 = vpop.f32.mrf.mxu0 }
  0xd9   : > { %v412_v48 = vadd.f32 %v1630_v19, %v411_v47 }
  0xdb   : > { %v439_v51 = vmax.f32 %v412_v48, 0.0 }
  0xe0   : > { %v413_v49 = vpop.f32.mrf.mxu0 }
  0xe1   : > { %v414_v50 = vadd.f32 %v1630_v19, %v413_v49 }
  0xe3   : > { %v440_v52 = vmax.f32 %v414_v50, 0.0 }
  0xe5   : > { %v451_v53 = vpack.c.bf16 %v440_v52, %v439_v51 }
  0xe7   : > { %551 = vmatmul.bf16.gmra.mxu1 %v451_v53 }
  0xe8   : > { %v416_v54 = vpop.f32.mrf.mxu0 }
  0xe9   : > { %v417_v55 = vadd.f32 %v1630_v19, %v416_v54 }
  0xeb   : > { %v441_v59 = vmax.f32 %v417_v55, 0.0 }
  0xf0   : > { %v418_v56 = vpop.f32.mrf.mxu0 }
  0xf1   : > { %v419_v57 = vadd.f32 %v1630_v19, %v418_v56 }
  0xf3   : > { %v442_v60 = vmax.f32 %v419_v57, 0.0 }
  0xf5   : > { %v452_v61 = vpack.c.bf16 %v442_v60, %v441_v59 }
  0xf7   : > { %556 = vmatmul.bf16.gmra.mxu1 %v452_v61 }
  0xf8   : > { %v421_v63 = vpop.f32.mrf.mxu0 }
  0xf9   : > { %v422_v2 = vadd.f32 %v1630_v19, %v421_v63 }
  0xfb   : > { %v443_v6 = vmax.f32 %v422_v2, 0.0 }
 0x100   : > { %v423_v3 = vpop.f32.mrf.mxu0 }
 0x101   : > { %v424_v4 = vadd.f32 %v1630_v19, %v423_v3 }
 0x103   : > { %v444_v7 = vmax.f32 %v424_v4, 0.0 }
 0x105   : > { %v453_v8 = vpack.c.bf16 %v444_v7, %v443_v6 }
 0x107   : > { %561 = vmatmul.bf16.vlgmr.msra.gmra.mxu3 %v453_v8 }
 0x108   : > { %v426_v10 = vpop.f32.mrf.mxu0 }
 0x109   : > { %v427_v13 = vadd.f32 %v1630_v19, %v426_v10 }
 0x10b   : > { %v445_v16 = vmax.f32 %v427_v13, 0.0 }
 0x110   : > { %v428_v14 = vpop.f32.mrf.mxu0 }
 0x111   : > { %v429_v15 = vadd.f32 %v1630_v19, %v428_v14 }
 0x113   : > { %v446_v17 = vmax.f32 %v429_v15, 0.0 }
 0x115   : > { %v454_v18 = vpack.c.bf16 %v446_v17, %v445_v16 }
 0x117   : > { %566 = vmatmul.bf16.gmra.mxu3 %v454_v18 }
 0x124   : > { %v532_v20 = vpop.f32.mrf.mxu1 }
 0x125   : > { %v533_v22 = vadd.f32 %v1355_v21, %v532_v20 }
 0x127   : > { %v572_v25 = vmax.f32 %v533_v22, 0.0 }
 0x12c   : > { %v534_v23 = vpop.f32.mrf.mxu1 }
 0x12d   : > { %v535_v24 = vadd.f32 %v1355_v21, %v534_v23 }
 0x12f   : > { %v573_v26 = vmax.f32 %v535_v24, 0.0 }
 0x131   : > { %v588_v27 = vpack.c.bf16 %v573_v26, %v572_v25 }
 0x133   : > { %672 = vmatmul.bf16.vlgmr.msra.gmra.mxu2 %v588_v27  ;;  %v713_v27 = vlaneseq }
 0x134   : > { %v537_v28 = vpop.f32.mrf.mxu1 }
 0x135   : > { %v538_v29 = vadd.f32 %v1355_v21, %v537_v28 }
 0x137   : > { %v574_v31 = vmax.f32 %v538_v29, 0.0 }
 0x13c   : > { %v539_v30 = vpop.f32.mrf.mxu1 }
 0x13d   : > { %v540_v19 = vadd.f32 %v1355_v21, %v539_v30 }
 0x13f   : > { %v575_v32 = vmax.f32 %v540_v19, 0.0  ;;  %v1690_v19 = vand.u32 127, %v713_v27 }
 0x141   : > { %v589_v33 = vpack.c.bf16 %v575_v32, %v574_v31  ;;  %vm715_vm3 = vcmp.lt.s32.totalorder %v1690_v19, 12 }
 0x143   : > { %677 = vmatmul.bf16.gmra.mxu2 %v589_v33 }
 0x144   : > { %v542_v34 = vpop.f32.mrf.mxu1 }
 0x145   : > { %v543_v35 = vadd.f32 %v1355_v21, %v542_v34 }
 0x147   : > { %v576_v38 = vmax.f32 %v543_v35, 0.0 }
 0x14c   : > { %v544_v36 = vpop.f32.mrf.mxu1 }
 0x14d   : > { %v545_v37 = vadd.f32 %v1355_v21, %v544_v36 }
 0x14f   : > { %v577_v39 = vmax.f32 %v545_v37, 0.0 }
 0x151   : > { %v590_v40 = vpack.c.bf16 %v577_v39, %v576_v38 }
 0x153   : > { %682 = vmatmul.bf16.gmra.mxu2 %v590_v40 }
 0x154   : > { %v547_v41 = vpop.f32.mrf.mxu1 }
 0x155   : > { %v548_v42 = vadd.f32 %v1355_v21, %v547_v41 }
 0x157   : > { %v578_v45 = vmax.f32 %v548_v42, 0.0 }
 0x15c   : > { %v549_v43 = vpop.f32.mrf.mxu1 }
 0x15d   : > { %v550_v44 = vadd.f32 %v1355_v21, %v549_v43 }
 0x15f   : > { %v579_v46 = vmax.f32 %v550_v44, 0.0 }
 0x161   : > { %v591_v47 = vpack.c.bf16 %v579_v46, %v578_v45 }
 0x163   : > { %687 = vmatmul.bf16.gmra.mxu2 %v591_v47 }
 0x164   : > { %v552_v48 = vpop.f32.mrf.mxu1 }
 0x165   : > { %v553_v49 = vadd.f32 %v1355_v21, %v552_v48 }
 0x167   : > { %v580_v52 = vmax.f32 %v553_v49, 0.0 }
 0x16c   : > { %v554_v50 = vpop.f32.mrf.mxu1 }
 0x16d   : > { %v555_v51 = vadd.f32 %v1355_v21, %v554_v50 }
 0x16f   : > { %v581_v53 = vmax.f32 %v555_v51, 0.0 }
 0x171   : > { %v592_v54 = vpack.c.bf16 %v581_v53, %v580_v52 }
 0x173   : > { %692 = vmatmul.bf16.gmra.mxu2 %v592_v54 }
 0x174   : > { %v557_v55 = vpop.f32.mrf.mxu1 }
 0x175   : > { %v558_v56 = vadd.f32 %v1355_v21, %v557_v55 }
 0x177   : > { %v582_v59 = vmax.f32 %v558_v56, 0.0 }
 0x17c   : > { %v559_v57 = vpop.f32.mrf.mxu1 }
 0x17d   : > { %v560_v58 = vadd.f32 %v1355_v21, %v559_v57 }
 0x17f   : > { %v583_v60 = vmax.f32 %v560_v58, 0.0 }
 0x181   : > { %v593_v61 = vpack.c.bf16 %v583_v60, %v582_v59 }
 0x183   : > { %697 = vmatmul.bf16.gmra.mxu2 %v593_v61 }
 0x18a   : > { %v562_v62 = vpop.f32.mrf.mxu3 }
 0x18b   : > { %v563_v63 = vadd.f32 %v1355_v21, %v562_v62 }
 0x18d   : > { %v584_v2 = vmax.f32 %v563_v63, 0.0 }
 0x192   : > { %v564_v0 = vpop.f32.mrf.mxu3 }
 0x193   : > { %v565_v1 = vadd.f32 %v1355_v21, %v564_v0 }
 0x195   : > { %v585_v3 = vmax.f32 %v565_v1, 0.0 }
 0x197   : > { %v594_v4 = vpack.c.bf16 %v585_v3, %v584_v2 }
 0x199   : > { %702 = vmatmul.bf16.vlgmr.msrb.gmra.mxu3 %v594_v4 }
 0x19a   : > { %v567_v5 = vpop.f32.mrf.mxu3 }
 0x19b   : > { %v568_v6 = vadd.f32 %v1355_v21, %v567_v5 }
 0x19d   : > { %v586_v9 = vmax.f32 %v568_v6, 0.0 }
 0x1a2   : > { %v569_v7 = vpop.f32.mrf.mxu3 }
 0x1a3   : > { %v570_v8 = vadd.f32 %v1355_v21, %v569_v7 }
 0x1a5   : > { %v587_v10 = vmax.f32 %v570_v8, 0.0 }
 0x1a7   : > { %v595_v11 = vpack.c.bf16 %v587_v10, %v586_v9 }
 0x1a9   : > { %707 = vmatmul.bf16.gmra.mxu3 %v595_v11 }
 0x1b6   : > { %v673_v13 = vpop.f32.mrf.mxu2 }
 0x1b7   : > { %v674_v14 = vadd.f32 %v1678_v12, %v673_v13 }
 0x1b9   : > { %v1249_v15 = vmul.f32 -1.442695, %v674_v14 }
 0x1bb   : > { %1357 = vpow2.f32 %v1249_v15 }
 0x1be   : > { %v675_v16 = vpop.f32.mrf.mxu2 }
 0x1bf   : > { %v1682_v17 = vadd.f32 %v1678_v12, %v675_v16 }
 0x1c1   : > { %v1358_v18 = vpop.eup %1357  ;;  %v1250_v20 = vmul.f32 -1.442695, %v1682_v17 }
 0x1c2   : > { %v764_v21 = vadd.f32 1.0, %v1358_v18 }
 0x1c3   : > { %1359 = vpow2.f32 %v1250_v20 }
 0x1c4   : > { %1361 = vrcp.f32 %v764_v21  ;;  %v791_v31 = vand.u32 2147483648, %v764_v21  ;;  %v789_v34 = vand.u32 2147483647, %v764_v21  ;;  %vm785_vm2 = vweird.f32 %v764_v21 }
 0x1c6   : > { %v678_v22 = vpop.f32.mrf.mxu2  ;;  %v792_v40 = vor.u32 1.1754944e-38, %v791_v31  ;;  %vm790_vm5 = vcmp.eq.f32.partialorder %v789_v34, 8.507059e+37 }
 0x1c7   : > { %v1686_v23 = vadd.f32 %v1678_v12, %v678_v22 }
 0x1c9   : > { %v1360_v24 = vpop.eup %1359  ;;  %v1251_v25 = vmul.f32 -1.442695, %v1686_v23 }
 0x1ca   : > { %v1362_v26 = vpop.eup %1361  ;;  %v765_v28 = vadd.f32 1.0, %v1360_v24 }
 0x1cb   : > { %v781_v29 = vmul.f32 %v1362_v26, %v764_v21  ;;  %1363 = vpow2.f32 %v1251_v25  ;;  %vm786_vm1 = vweird.f32 %v1362_v26 }
 0x1cc   : > { %1365 = vrcp.f32 %v765_v28  ;;  %vm787_vm4 = vmor %vm785_vm2, %vm786_vm1  ;;  %v806_v47 = vand.u32 2147483648, %v765_v28  ;;  %v804_v50 = vand.u32 2147483647, %v765_v28  ;;  %vm800_vm7 = vweird.f32 %v765_v28 }
 0x1cd   : > { %v782_v30 = vsub.f32 1.0, %v781_v29 }
 0x1ce   : > { %v680_v32 = vpop.f32.mrf.mxu2  ;;  %v807_v56 = vor.u32 1.1754944e-38, %v806_v47  ;;  %vm805_vm9 = vcmp.eq.f32.partialorder %v804_v50, 8.507059e+37 }
 0x1cf   : > { %v783_v33 = vmul.f32 %v1362_v26, %v782_v30  ;;  %v1693_v35 = vadd.f32 %v1678_v12, %v680_v32 }
 0x1d1   : > { %v1364_v36 = vpop.eup %1363  ;;  %v784_v37 = vadd.f32 %v1362_v26, %v783_v33  ;;  %v1252_v38 = vmul.f32 -1.442695, %v1693_v35 }
 0x1d2   : > { %v1366_v39 = vpop.eup %1365  ;;  %v766_v41 = vadd.f32 1.0, %v1364_v36 }
 0x1d3   : > { %v788_v42 = vsel %vm787_vm4, %v1362_v26, %v784_v37  ;;  %v796_v43 = vmul.f32 %v1366_v39, %v765_v28  ;;  %1367 = vpow2.f32 %v1252_v38  ;;  %vm801_vm6 = vweird.f32 %v1366_v39 }
 0x1d4   : > { %v793_v44 = vsel %vm790_vm5, %v792_v40, %v788_v42  ;;  %1369 = vrcp.f32 %v766_v41  ;;  %vm802_vm8 = vmor %vm800_vm7, %vm801_vm6  ;;  %v821_v63 = vand.u32 2147483648, %v766_v41  ;;  %v819_v2 = vand.u32 2147483647, %v766_v41 }
 0x1d5   : > { %v1020_v45 = vsel %vm715_vm3, %v793_v44, %v674_v14  ;;  %v797_v46 = vsub.f32 1.0, %v796_v43  ;;  %vm815_vm11 = vweird.f32 %v766_v41 }
 0x1d6   : > { %1036 = vst [vmem:[%s1701_s20] sm:$0xff] %v1020_v45  ;;  %v683_v48 = vpop.f32.mrf.mxu2  ;;  %v822_v8 = vor.u32 1.1754944e-38, %v821_v63  ;;  %vm820_vm13 = vcmp.eq.f32.partialorder %v819_v2, 8.507059e+37 }
 0x1d7   : > { %v798_v49 = vmul.f32 %v1366_v39, %v797_v46  ;;  %v1705_v51 = vadd.f32 %v1678_v12, %v683_v48 }
 0x1d9   : > { %v1368_v52 = vpop.eup %1367  ;;  %v799_v53 = vadd.f32 %v1366_v39, %v798_v49  ;;  %v1253_v54 = vmul.f32 -1.442695, %v1705_v51 }
 0x1da   : > { %v1370_v55 = vpop.eup %1369  ;;  %v767_v57 = vadd.f32 1.0, %v1368_v52 }
 0x1db   : > { %v803_v58 = vsel %vm802_vm8, %v1366_v39, %v799_v53  ;;  %v811_v59 = vmul.f32 %v1370_v55, %v766_v41  ;;  %1371 = vpow2.f32 %v1253_v54  ;;  %vm816_vm10 = vweird.f32 %v1370_v55 }
 0x1dc   : > { %v808_v60 = vsel %vm805_vm9, %v807_v56, %v803_v58  ;;  %1373 = vrcp.f32 %v767_v57  ;;  %vm817_vm12 = vmor %vm815_vm11, %vm816_vm10  ;;  %v836_v16 = vand.u32 2147483648, %v767_v57  ;;  %v834_v20 = vand.u32 2147483647, %v767_v57 }
 0x1dd   : > { %v1021_v61 = vsel %vm715_vm3, %v808_v60, %v1682_v17  ;;  %v812_v62 = vsub.f32 1.0, %v811_v59  ;;  %vm830_vm15 = vweird.f32 %v767_v57 }
 0x1de   : > { %1037 = vst [vmem:[%s1701_s20 + $0x8] sm:$0xff] %v1021_v61  ;;  %v685_v0 = vpop.f32.mrf.mxu2  ;;  %v837_v27 = vor.u32 1.1754944e-38, %v836_v16  ;;  %vm835_vm1 = vcmp.eq.f32.partialorder %v834_v20, 8.507059e+37 }
 0x1df   : > { %v813_v1 = vmul.f32 %v1370_v55, %v812_v62  ;;  %v1713_v3 = vadd.f32 %v1678_v12, %v685_v0 }
 0x1e1   : > { %v1372_v4 = vpop.eup %1371  ;;  %v814_v5 = vadd.f32 %v1370_v55, %v813_v1  ;;  %v1254_v6 = vmul.f32 -1.442695, %v1713_v3 }
 0x1e2   : > { %v1374_v7 = vpop.eup %1373  ;;  %v768_v9 = vadd.f32 1.0, %v1372_v4 }
 0x1e3   : > { %v818_v10 = vsel %vm817_vm12, %v1370_v55, %v814_v5  ;;  %v826_v11 = vmul.f32 %v1374_v7, %v767_v57  ;;  %1375 = vpow2.f32 %v1254_v6  ;;  %vm831_vm14 = vweird.f32 %v1374_v7 }
 0x1e4   : > { %v823_v13 = vsel %vm820_vm13, %v822_v8, %v818_v10  ;;  %1377 = vrcp.f32 %v768_v9  ;;  %vm832_vm0 = vmor %vm830_vm15, %vm831_vm14  ;;  %v851_v33 = vand.u32 2147483648, %v768_v9  ;;  %v849_v37 = vand.u32 2147483647, %v768_v9 }
 0x1e5   : > { %v1022_v14 = vsel %vm715_vm3, %v823_v13, %v1686_v23  ;;  %v827_v15 = vsub.f32 1.0, %v826_v11  ;;  %vm845_vm4 = vweird.f32 %v768_v9 }
 0x1e6   : > { %1038 = vst [vmem:[%s1701_s20 + $0x10] sm:$0xff] %v1022_v14  ;;  %v688_v17 = vpop.f32.mrf.mxu2  ;;  %v852_v43 = vor.u32 1.1754944e-38, %v851_v33  ;;  %vm850_vm6 = vcmp.eq.f32.partialorder %v849_v37, 8.507059e+37 }
 0x1e7   : > { %v828_v18 = vmul.f32 %v1374_v7, %v827_v15  ;;  %v1721_v21 = vadd.f32 %v1678_v12, %v688_v17 }
 0x1e9   : > { %v1376_v22 = vpop.eup %1375  ;;  %v829_v24 = vadd.f32 %v1374_v7, %v828_v18  ;;  %v1255_v25 = vmul.f32 -1.442695, %v1721_v21 }
 0x1ea   : > { %v1378_v26 = vpop.eup %1377  ;;  %v769_v23 = vadd.f32 1.0, %v1376_v22 }
 0x1eb   : > { %v833_v28 = vsel %vm832_vm0, %v1374_v7, %v829_v24  ;;  %v841_v29 = vmul.f32 %v1378_v26, %v768_v9  ;;  %1379 = vpow2.f32 %v1255_v25  ;;  %vm846_vm2 = vweird.f32 %v1378_v26 }
 0x1ec   : > { %v838_v30 = vsel %vm835_vm1, %v837_v27, %v833_v28  ;;  %1381 = vrcp.f32 %v769_v23  ;;  %vm847_vm5 = vmor %vm845_vm4, %vm846_vm2  ;;  %v866_v49 = vand.u32 2147483648, %v769_v23  ;;  %v864_v53 = vand.u32 2147483647, %v769_v23 }
 0x1ed   : > { %v1023_v31 = vsel %vm715_vm3, %v838_v30, %v1693_v35  ;;  %v842_v32 = vsub.f32 1.0, %v841_v29  ;;  %vm860_vm8 = vweird.f32 %v769_v23 }
 0x1ee   : > { %1039 = vst [vmem:[%s1701_s20 + $0x18] sm:$0xff] %v1023_v31  ;;  %v690_v34 = vpop.f32.mrf.mxu2  ;;  %v867_v59 = vor.u32 1.1754944e-38, %v866_v49  ;;  %vm865_vm10 = vcmp.eq.f32.partialorder %v864_v53, 8.507059e+37 }
 0x1ef   : > { %v843_v36 = vmul.f32 %v1378_v26, %v842_v32  ;;  %v1729_v38 = vadd.f32 %v1678_v12, %v690_v34 }
 0x1f1   : > { %v1380_v39 = vpop.eup %1379  ;;  %v844_v40 = vadd.f32 %v1378_v26, %v843_v36  ;;  %v1256_v41 = vmul.f32 -1.442695, %v1729_v38 }
 0x1f2   : > { %v1382_v42 = vpop.eup %1381  ;;  %v770_v35 = vadd.f32 1.0, %v1380_v39 }
 0x1f3   : > { %v848_v44 = vsel %vm847_vm5, %v1378_v26, %v844_v40  ;;  %v856_v45 = vmul.f32 %v1382_v42, %v769_v23  ;;  %1383 = vpow2.f32 %v1256_v41  ;;  %vm861_vm7 = vweird.f32 %v1382_v42 }
 0x1f4   : > { %v853_v46 = vsel %vm850_vm6, %v852_v43, %v848_v44  ;;  %1385 = vrcp.f32 %v770_v35  ;;  %vm862_vm9 = vmor %vm860_vm8, %vm861_vm7  ;;  %v881_v1 = vand.u32 2147483648, %v770_v35  ;;  %v879_v5 = vand.u32 2147483647, %v770_v35 }
 0x1f5   : > { %v1024_v47 = vsel %vm715_vm3, %v853_v46, %v1705_v51  ;;  %v857_v48 = vsub.f32 1.0, %v856_v45  ;;  %vm875_vm12 = vweird.f32 %v770_v35 }
 0x1f6   : > { %1040 = vst [vmem:[%s1701_s20 + $0x20] sm:$0xff] %v1024_v47  ;;  %v693_v50 = vpop.f32.mrf.mxu2  ;;  %v882_v11 = vor.u32 1.1754944e-38, %v881_v1  ;;  %vm880_vm14 = vcmp.eq.f32.partialorder %v879_v5, 8.507059e+37 }
 0x1f7   : > { %v858_v52 = vmul.f32 %v1382_v42, %v857_v48  ;;  %v1737_v54 = vadd.f32 %v1678_v12, %v693_v50 }
 0x1f9   : > { %v1384_v55 = vpop.eup %1383  ;;  %v859_v56 = vadd.f32 %v1382_v42, %v858_v52  ;;  %v1257_v57 = vmul.f32 -1.442695, %v1737_v54 }
 0x1fa   : > { %v1386_v58 = vpop.eup %1385  ;;  %v771_v51 = vadd.f32 1.0, %v1384_v55 }
 0x1fb   : > { %v863_v60 = vsel %vm862_vm9, %v1382_v42, %v859_v56  ;;  %v871_v61 = vmul.f32 %v1386_v58, %v770_v35  ;;  %1387 = vpow2.f32 %v1257_v57  ;;  %vm876_vm11 = vweird.f32 %v1386_v58 }
 0x1fc   : > { %v868_v62 = vsel %vm865_vm10, %v867_v59, %v863_v60  ;;  %1389 = vrcp.f32 %v771_v51  ;;  %vm877_vm13 = vmor %vm875_vm12, %vm876_vm11  ;;  %v896_v18 = vand.u32 2147483648, %v771_v51  ;;  %v894_v24 = vand.u32 2147483647, %v771_v51 }
 0x1fd   : > { %v1025_v63 = vsel %vm715_vm3, %v868_v62, %v1713_v3  ;;  %v872_v0 = vsub.f32 1.0, %v871_v61  ;;  %vm890_vm0 = vweird.f32 %v771_v51 }
 0x1fe   : > { %1041 = vst [vmem:[%s1701_s20 + $0x28] sm:$0xff] %v1025_v63  ;;  %v695_v2 = vpop.f32.mrf.mxu2  ;;  %v897_v29 = vor.u32 1.1754944e-38, %v896_v18  ;;  %vm895_vm2 = vcmp.eq.f32.partialorder %v894_v24, 8.507059e+37 }
 0x1ff   : > { %v873_v4 = vmul.f32 %v1386_v58, %v872_v0  ;;  %v1745_v6 = vadd.f32 %v1678_v12, %v695_v2 }
 0x201   : > { %v1388_v7 = vpop.eup %1387  ;;  %v874_v8 = vadd.f32 %v1386_v58, %v873_v4  ;;  %v1258_v9 = vmul.f32 -1.442695, %v1745_v6 }
 0x202   : > { %v1390_v10 = vpop.eup %1389  ;;  %v772_v3 = vadd.f32 1.0, %v1388_v7 }
 0x203   : > { %v878_v13 = vsel %vm877_vm13, %v1386_v58, %v874_v8  ;;  %v886_v14 = vmul.f32 %v1390_v10, %v771_v51  ;;  %1391 = vpow2.f32 %v1258_v9  ;;  %vm891_vm15 = vweird.f32 %v1390_v10 }
 0x204   : > { %v883_v15 = vsel %vm880_vm14, %v882_v11, %v878_v13  ;;  %1393 = vrcp.f32 %v772_v3  ;;  %vm892_vm1 = vmor %vm890_vm0, %vm891_vm15  ;;  %v911_v36 = vand.u32 2147483648, %v772_v3  ;;  %v909_v40 = vand.u32 2147483647, %v772_v3 }
 0x205   : > { %v1026_v16 = vsel %vm715_vm3, %v883_v15, %v1721_v21  ;;  %v887_v17 = vsub.f32 1.0, %v886_v14  ;;  %vm905_vm5 = vweird.f32 %v772_v3 }
 0x206   : > { %1042 = vst [vmem:[%s1701_s20 + $0x30] sm:$0xff] %v1026_v16  ;;  %v698_v20 = vpop.f32.mrf.mxu2  ;;  %v912_v45 = vor.u32 1.1754944e-38, %v911_v36  ;;  %vm910_vm7 = vcmp.eq.f32.partialorder %v909_v40, 8.507059e+37 }
 0x207   : > { %v888_v22 = vmul.f32 %v1390_v10, %v887_v17  ;;  %v1753_v25 = vadd.f32 %v1678_v12, %v698_v20 }
 0x209   : > { %v1392_v26 = vpop.eup %1391  ;;  %v889_v27 = vadd.f32 %v1390_v10, %v888_v22  ;;  %v1259_v23 = vmul.f32 -1.442695, %v1753_v25 }
 0x20a   : > { %v1394_v28 = vpop.eup %1393  ;;  %v773_v21 = vadd.f32 1.0, %v1392_v26 }
 0x20b   : > { %v893_v30 = vsel %vm892_vm1, %v1390_v10, %v889_v27  ;;  %v901_v31 = vmul.f32 %v1394_v28, %v772_v3  ;;  %1395 = vpow2.f32 %v1259_v23  ;;  %vm906_vm4 = vweird.f32 %v1394_v28 }
 0x20c   : > { %v898_v32 = vsel %vm895_vm2, %v897_v29, %v893_v30  ;;  %1397 = vrcp.f32 %v773_v21  ;;  %vm907_vm6 = vmor %vm905_vm5, %vm906_vm4  ;;  %v926_v52 = vand.u32 2147483648, %v773_v21  ;;  %v924_v55 = vand.u32 2147483647, %v773_v21 }
 0x20d   : > { %v1027_v33 = vsel %vm715_vm3, %v898_v32, %v1729_v38  ;;  %v902_v34 = vsub.f32 1.0, %v901_v31  ;;  %vm920_vm9 = vweird.f32 %v773_v21 }
 0x20e   : > { %1043 = vst [vmem:[%s1701_s20 + $0x38] sm:$0xff] %v1027_v33  ;;  %v700_v37 = vpop.f32.mrf.mxu2  ;;  %v927_v59 = vor.u32 1.1754944e-38, %v926_v52  ;;  %vm925_vm11 = vcmp.eq.f32.partialorder %v924_v55, 8.507059e+37 }
 0x20f   : > { %v903_v39 = vmul.f32 %v1394_v28, %v902_v34  ;;  %v1761_v41 = vadd.f32 %v1678_v12, %v700_v37 }
 0x211   : > { %v1396_v42 = vpop.eup %1395  ;;  %v904_v43 = vadd.f32 %v1394_v28, %v903_v39  ;;  %v1260_v35 = vmul.f32 -1.442695, %v1761_v41 }
 0x212   : > { %v1398_v44 = vpop.eup %1397  ;;  %v774_v38 = vadd.f32 1.0, %v1396_v42 }
 0x213   : > { %v908_v46 = vsel %vm907_vm6, %v1394_v28, %v904_v43  ;;  %v916_v47 = vmul.f32 %v1398_v44, %v773_v21  ;;  %1399 = vpow2.f32 %v1260_v35  ;;  %vm921_vm8 = vweird.f32 %v1398_v44 }
 0x214   : > { %v913_v48 = vsel %vm910_vm7, %v912_v45, %v908_v46  ;;  %1401 = vrcp.f32 %v774_v38  ;;  %vm922_vm10 = vmor %vm920_vm9, %vm921_vm8  ;;  %v941_v2 = vand.u32 2147483648, %v774_v38  ;;  %v939_v5 = vand.u32 2147483647, %v774_v38 }
 0x215   : > { %v1028_v49 = vsel %vm715_vm3, %v913_v48, %v1737_v54  ;;  %v917_v50 = vsub.f32 1.0, %v916_v47  ;;  %vm935_vm13 = vweird.f32 %v774_v38 }
 0x216   : > { %1044 = vst [vmem:[%s1701_s20 + $0x40] sm:$0xff] %v1028_v49  ;;  %v942_v10 = vor.u32 1.1754944e-38, %v941_v2  ;;  %vm940_vm15 = vcmp.eq.f32.partialorder %v939_v5, 8.507059e+37 }
 0x217   : > { %v918_v53 = vmul.f32 %v1398_v44, %v917_v50 }
 0x219   : > { %v1400_v56 = vpop.eup %1399  ;;  %v919_v57 = vadd.f32 %v1398_v44, %v918_v53 }
 0x21a   : > { %v1402_v58 = vpop.eup %1401  ;;  %v775_v51 = vadd.f32 1.0, %v1400_v56 }
 0x21b   : > { %v923_v60 = vsel %vm922_vm10, %v1398_v44, %v919_v57  ;;  %v931_v61 = vmul.f32 %v1402_v58, %v774_v38  ;;  %vm936_vm12 = vweird.f32 %v1402_v58 }
 0x21c   : > { %v928_v62 = vsel %vm925_vm11, %v927_v59, %v923_v60  ;;  %1403 = vrcp.f32 %v775_v51  ;;  %v703_v54 = vpop.f32.mrf.mxu3  ;;  %vm937_vm14 = vmor %vm935_vm13, %vm936_vm12  ;;  %v956_v17 = vand.u32 2147483648, %v775_v51  ;;  %v954_v22 = vand.u32 2147483647, %v775_v51 }
 0x21d   : > { %v1029_v63 = vsel %vm715_vm3, %v928_v62, %v1745_v6  ;;  %v932_v0 = vsub.f32 1.0, %v931_v61  ;;  %v1772_v1 = vadd.f32 %v1678_v12, %v703_v54  ;;  %vm950_vm1 = vweird.f32 %v775_v51 }
 0x21e   : > { %1045 = vst [vmem:[%s1701_s20 + $0x48] sm:$0xff] %v1029_v63  ;;  %v957_v23 = vor.u32 1.1754944e-38, %v956_v17  ;;  %vm955_vm4 = vcmp.eq.f32.partialorder %v954_v22, 8.507059e+37 }
 0x21f   : > { %v933_v4 = vmul.f32 %v1402_v58, %v932_v0  ;;  %v1261_v7 = vmul.f32 -1.442695, %v1772_v1 }
 0x221   : > { %v934_v8 = vadd.f32 %v1402_v58, %v933_v4  ;;  %1405 = vpow2.f32 %v1261_v7 }
 0x222   : > { %v1404_v9 = vpop.eup %1403 }
 0x223   : > { %v938_v11 = vsel %vm937_vm14, %v1402_v58, %v934_v8  ;;  %v946_v6 = vmul.f32 %v1404_v9, %v775_v51  ;;  %vm951_vm0 = vweird.f32 %v1404_v9 }
 0x224   : > { %v943_v3 = vsel %vm940_vm15, %v942_v10, %v938_v11  ;;  %v705_v13 = vpop.f32.mrf.mxu3  ;;  %vm952_vm2 = vmor %vm950_vm1, %vm951_vm0 }
 0x225   : > { %v1030_v14 = vsel %vm715_vm3, %v943_v3, %v1753_v25  ;;  %v947_v15 = vsub.f32 1.0, %v946_v6  ;;  %v1780_v16 = vadd.f32 %v1678_v12, %v705_v13 }
 0x226   : > { %1046 = vst [vmem:[%s1701_s20 + $0x50] sm:$0xff] %v1030_v14 }
 0x227   : > { %v1406_v18 = vpop.eup %1405  ;;  %v948_v20 = vmul.f32 %v1404_v9, %v947_v15  ;;  %v1262_v24 = vmul.f32 -1.442695, %v1780_v16 }
 0x228   : > { %v776_v26 = vadd.f32 1.0, %v1406_v18 }
 0x229   : > { %v949_v27 = vadd.f32 %v1404_v9, %v948_v20  ;;  %1407 = vpow2.f32 %v1262_v24 }
 0x22a   : > { %1409 = vrcp.f32 %v776_v26  ;;  %v971_v39 = vand.u32 2147483648, %v776_v26  ;;  %v969_v43 = vand.u32 2147483647, %v776_v26  ;;  %vm965_vm6 = vweird.f32 %v776_v26 }
 0x22b   : > { %v953_v25 = vsel %vm952_vm2, %v1404_v9, %v949_v27 }
 0x22c   : > { %v958_v28 = vsel %vm955_vm4, %v957_v23, %v953_v25  ;;  %v708_v29 = vpop.f32.mrf.mxu3  ;;  %v972_v46 = vor.u32 1.1754944e-38, %v971_v39  ;;  %vm970_vm8 = vcmp.eq.f32.partialorder %v969_v43, 8.507059e+37 }
 0x22d   : > { %v1031_v21 = vsel %vm715_vm3, %v958_v28, %v1761_v41  ;;  %v1788_v30 = vadd.f32 %v1678_v12, %v708_v29 }
 0x22e   : > { %1047 = vst [vmem:[%s1701_s20 + $0x58] sm:$0xff] %v1031_v21 }
 0x22f   : > { %v1408_v31 = vpop.eup %1407  ;;  %v1263_v32 = vmul.f32 -1.442695, %v1788_v30 }
 0x230   : > { %v1410_v33 = vpop.eup %1409  ;;  %v777_v34 = vadd.f32 1.0, %v1408_v31 }
 0x231   : > { %v961_v36 = vmul.f32 %v1410_v33, %v776_v26  ;;  %1411 = vpow2.f32 %v1263_v32  ;;  %vm966_vm5 = vweird.f32 %v1410_v33 }
 0x232   : > { %1413 = vrcp.f32 %v777_v34  ;;  %vm967_vm7 = vmor %vm965_vm6, %vm966_vm5  ;;  %v986_v53 = vand.u32 2147483648, %v777_v34  ;;  %v984_v56 = vand.u32 2147483647, %v777_v34  ;;  %vm980_vm10 = vweird.f32 %v777_v34 }
 0x233   : > { %v962_v37 = vsub.f32 1.0, %v961_v36 }
 0x234   : > { %v710_v40 = vpop.f32.mrf.mxu3  ;;  %v987_v51 = vor.u32 1.1754944e-38, %v986_v53  ;;  %vm985_vm12 = vcmp.eq.f32.partialorder %v984_v56, 8.507059e+37 }
 0x235   : > { %v963_v42 = vmul.f32 %v1410_v33, %v962_v37  ;;  %v1793_v41 = vadd.f32 %v1678_v12, %v710_v40 }
 0x237   : > { %v1412_v35 = vpop.eup %1411  ;;  %v964_v44 = vadd.f32 %v1410_v33, %v963_v42  ;;  %v1264_v45 = vmul.f32 -1.442695, %v1793_v41 }
 0x238   : > { %v1414_v38 = vpop.eup %1413  ;;  %v778_v47 = vadd.f32 1.0, %v1412_v35 }
 0x239   : > { %v968_v48 = vsel %vm967_vm7, %v1410_v33, %v964_v44  ;;  %v976_v49 = vmul.f32 %v1414_v38, %v777_v34  ;;  %1415 = vpow2.f32 %v1264_v45  ;;  %vm981_vm9 = vweird.f32 %v1414_v38 }
 0x23a   : > { %v973_v50 = vsel %vm970_vm8, %v972_v46, %v968_v48  ;;  %1417 = vrcp.f32 %v778_v47  ;;  %vm982_vm11 = vmor %vm980_vm10, %vm981_vm9  ;;  %v999_v4 = vand.u32 2147483647, %v778_v47  ;;  %vm995_vm14 = vweird.f32 %v778_v47 }
 0x23b   : > { %v1032_v12 = vsel %vm715_vm3, %v973_v50, %v1772_v1  ;;  %v977_v52 = vsub.f32 1.0, %v976_v49  ;;  %v1001_v1 = vand.u32 2147483648, %v778_v47 }
 0x23c   : > { %1048 = vst [vmem:[%s1701_s20 + $0x60] sm:$0xff] %v1032_v12  ;;  %vm1000_vm0 = vcmp.eq.f32.partialorder %v999_v4, 8.507059e+37 }
 0x23d   : > { %v978_v55 = vmul.f32 %v1414_v38, %v977_v52  ;;  %v1002_v8 = vor.u32 1.1754944e-38, %v1001_v1 }
 0x23f   : > { %v1416_v57 = vpop.eup %1415  ;;  %v979_v58 = vadd.f32 %v1414_v38, %v978_v55 }
 0x240   : > { %v1418_v59 = vpop.eup %1417  ;;  %v779_v60 = vadd.f32 1.0, %v1416_v57 }
 0x241   : > { %v983_v61 = vsel %vm982_vm11, %v1414_v38, %v979_v58  ;;  %v991_v62 = vmul.f32 %v1418_v59, %v778_v47  ;;  %vm996_vm13 = vweird.f32 %v1418_v59 }
 0x242   : > { %v988_v54 = vsel %vm985_vm12, %v987_v51, %v983_v61  ;;  %1419 = vrcp.f32 %v779_v60  ;;  %vm997_vm15 = vmor %vm995_vm14, %vm996_vm13  ;;  %v1016_v13 = vand.u32 2147483648, %v779_v60  ;;  %v1014_v15 = vand.u32 2147483647, %v779_v60 }
 0x243   : > { %v1033_v63 = vsel %vm715_vm3, %v988_v54, %v1780_v16  ;;  %v992_v0 = vsub.f32 1.0, %v991_v62  ;;  %vm1010_vm2 = vweird.f32 %v779_v60 }
 0x244   : > { %1049 = vst [vmem:[%s1701_s20 + $0x68] sm:$0xff] %v1033_v63  ;;  %v1017_v17 = vor.u32 1.1754944e-38, %v1016_v13  ;;  %vm1015_vm5 = vcmp.eq.f32.partialorder %v1014_v15, 8.507059e+37 }
 0x245   : > { %v993_v2 = vmul.f32 %v1418_v59, %v992_v0 }
 0x247   : > { %v994_v5 = vadd.f32 %v1418_v59, %v993_v2 }
 0x248   : > { %v1420_v7 = vpop.eup %1419 }
 0x249   : > { %v998_v9 = vsel %vm997_vm15, %v1418_v59, %v994_v5  ;;  %v1006_v10 = vmul.f32 %v1420_v7, %v779_v60  ;;  %vm1011_vm1 = vweird.f32 %v1420_v7 }
 0x24a   : > { %v1003_v11 = vsel %vm1000_vm0, %v1002_v8, %v998_v9  ;;  %vm1012_vm4 = vmor %vm1010_vm2, %vm1011_vm1 }
 0x24b   : > { %v1034_v6 = vsel %vm715_vm3, %v1003_v11, %v1788_v30  ;;  %v1007_v3 = vsub.f32 1.0, %v1006_v10 }
 0x24c   : > { %1050 = vst [vmem:[%s1701_s20 + $0x70] sm:$0xff] %v1034_v6 }
 0x24d   : > { %v1008_v14 = vmul.f32 %v1420_v7, %v1007_v3 }
 0x24f   : > { %v1009_v16 = vadd.f32 %v1420_v7, %v1008_v14 }
 0x251   : > { %v1013_v18 = vsel %vm1012_vm4, %v1420_v7, %v1009_v16 }
 0x252   : > { %v1018_v20 = vsel %vm1015_vm5, %v1017_v17, %v1013_v18 }
 0x253   : > { %v1035_v22 = vsel %vm715_vm3, %v1018_v20, %v1793_v41 }
 0x254   : > { %1051 = vst [vmem:[%s1701_s20 + $0x78] sm:$0xff] %v1035_v22 }
 0x255   : > { %1448 = shalt.err (!%p1445_p3)
}
 0x256   : > { %s1485_s18 = smov 128   ;;  %s1486_s20 = smov 8  }
 0x257   : > { %1313 = dma.vmem_to_hbm [thread:$0]  (%p1565_p5), %s1066_s28, 2048, %s1068_s9, %s1053_s21, %s1485_s18, %s1485_s18, %s1486_s20  }
 0x258 PF: > { %p1319_p4 = scmp.ge.s32.totalorder %s1483_s27, 2  ;;  %s1082_s23 = sand.u32 1, %s1471_s24  }
 0x259   : > { %s1083_s29 = scalar_lea.sflag [#allocation3], %s1082_s23 }
 0x25a   : > { %p1316_p7 = pnand %p1319_p4, %p1569_p6 }
 0x25c   : > { %p1317_p8 = pneg %p1316_p7 }
 0x25e   : > { %1466 = dma.done.wait (%p1317_p8), %s1083_s29, 2048  }
 0x25f   : > { %1468 = vsyncadd (%p1317_p8), %s1083_s29, 4294965248  ;;  %p17_p9 = scmp.ge.s32.totalorder %s1552_s30, 6   ;;  %s1856_s24 = smov %s1475_s25 }
 0x260   : > { %s1857_s25 = smov %s1479_s26  ;;  %s1858_s26 = smov %s1563_s10 }
 0x261   : > { %s1859_s27 = smov %s1552_s30  ;;  %19 = sbr.rel (!%p17_p9) target bundleno = 3 (0x3), region = 83 }
 0x266   :  { %1089 = vsyncpa [#allocation3], 1 }
 0x267   :  { %1091 = vsyncpa [#allocation3 + $0x1], 1 }

</bundles_post_ra>
